<compile_context>
chip_gen: v6e
topology: v6e:2x2x1
jax: 0.10.0
libtpu: 0.0.40
codegen_flags: <defaults>
</compile_context>

<pallas_src>
import jax
import jax.numpy as jnp
from jax.experimental import pallas as pl
from jax.experimental.pallas import tpu as pltpu

NEG_INF = -1e9


# --------------------------------------------------------------------------
# Kernel 1: tiled Linear (used for the hoisted input->hidden GRU projection)
# --------------------------------------------------------------------------
def _linear_kernel(x_ref, w_ref, b_ref, o_ref):
    o_ref[...] = (jnp.dot(x_ref[...], w_ref[...],
                          preferred_element_type=jnp.float32)
                  + b_ref[...]).astype(o_ref.dtype)


def _row_tile(n, cap=256):
    if n <= cap:
        return n
    for d in (256, 128, 64, 32, 16, 8):
        if n % d == 0:
            return d
    return n


def _run_linear(x, w, b):
    n, k = x.shape
    m = w.shape[1]
    bn = _row_tile(n)
    return pl.pallas_call(
        _linear_kernel,
        out_shape=jax.ShapeDtypeStruct((n, m), jnp.float32),
        grid_spec=pltpu.PrefetchScalarGridSpec(
            num_scalar_prefetch=0,
            grid=(n // bn,),
            in_specs=[pl.BlockSpec((bn, k), lambda i: (i, 0)),
                      pl.BlockSpec((k, m), lambda i: (0, 0)),
                      pl.BlockSpec((1, m), lambda i: (0, 0))],
            out_specs=pl.BlockSpec((bn, m), lambda i: (i, 0)),
        ),
        compiler_params=pltpu.CompilerParams(
            dimension_semantics=("parallel",),
            vmem_limit_bytes=32 * 1024 * 1024),
    )(x, w, b)


# --------------------------------------------------------------------------
# Kernel 2: full sequential decode loop (attention + GRU + cue GRU + fusion)
#           grid=(1,), lax.fori_loop over time, everything resident in VMEM.
# --------------------------------------------------------------------------
def _decode_loop_kernel(
    tmax_ref,                               # SMEM (1,) int32 (scalar prefetch)
    len_ref, gx_ref, h0_ref,
    am_ref, ab_ref, cm_ref, cb_ref,
    w_rhc_ref, w_rhh_ref, b_rhh_ref,
    w_cic_ref, w_ciq_ref, b_cih_ref, w_chh_ref, b_chh_ref,
    w_f1_ref, b_f1_ref, w_f2_ref, b_f2_ref,
    w_f3a_ref, w_f3b_ref, b_f3_ref,
    out_ref, hfin_ref,
    h_sc,
):
    B, H = h0_ref.shape

    # out_inputs starts as zeros (rows with t >= length stay zero, as in torch)
    out_ref[...] = jnp.zeros_like(out_ref)
    h_sc[...] = h0_ref[...]

    def attend(h_bf, mem_ref, bias_ref):
        # mem_ref: (B*S, H) bf16 flattened memory; bias_ref: (B, B*S) f32
        # block-diagonal additive mask (0 for own valid positions, -1e9 else).
        scores = jnp.dot(h_bf, mem_ref[...].T,
                         preferred_element_type=jnp.float32) + bias_ref[...]
        m = jnp.max(scores, axis=-1, keepdims=True)
        ew = jnp.exp(scores - m)
        attn = ew * pl.reciprocal(jnp.sum(ew, axis=-1, keepdims=True),
                                  approx=True)
        return jnp.dot(attn.astype(jnp.bfloat16), mem_ref[...],
                       preferred_element_type=jnp.float32)         # (B, H) f32

    def gru(gx, h, w_hh_ref, b_hh_ref):
        # PyTorch GRU gate order [r, z, n]; n uses r * (W_hn h + b_hn).
        gh = jnp.dot(h.astype(jnp.bfloat16), w_hh_ref[...],
                     preferred_element_type=jnp.float32) + b_hh_ref[...]
        r = jax.nn.sigmoid(gx[:, 0:H] + gh[:, 0:H])
        z = jax.nn.sigmoid(gx[:, H:2 * H] + gh[:, H:2 * H])
        n = jnp.tanh(gx[:, 2 * H:3 * H] + r * gh[:, 2 * H:3 * H])
        return (1.0 - z) * n + z * h

    def step(t, carry):
        h = h_sc[...]                              # (B, H) hidden BEFORE step
        h_bf = h.astype(jnp.bfloat16)

        ctx = attend(h_bf, am_ref, ab_ref)         # weighted_context
        cue_ctx = attend(h_bf, cm_ref, cb_ref)     # cue weighted_context
        ctx_bf = ctx.astype(jnp.bfloat16)

        # main GRU: input = [embedding, ctx]; embedding part precomputed (gx).
        gx_rnn = gx_ref[t] + jnp.dot(ctx_bf, w_rhc_ref[...],
                                     preferred_element_type=jnp.float32)
        rnn_h = gru(gx_rnn, h, w_rhh_ref, b_rhh_ref)

        # cue GRU: input = [ctx, cue_ctx]
        gx_cue = (jnp.dot(ctx_bf, w_cic_ref[...],
                          preferred_element_type=jnp.float32)
                  + jnp.dot(cue_ctx.astype(jnp.bfloat16), w_ciq_ref[...],
                            preferred_element_type=jnp.float32)
                  + b_cih_ref[...])
        cue_h = gru(gx_cue, h, w_chh_ref, b_chh_ref)

        # HGFU fusion gate
        h_y = jnp.tanh(jnp.dot(rnn_h.astype(jnp.bfloat16), w_f1_ref[...],
                               preferred_element_type=jnp.float32)
                       + b_f1_ref[...])
        h_c = jnp.tanh(jnp.dot(cue_h.astype(jnp.bfloat16), w_f2_ref[...],
                               preferred_element_type=jnp.float32)
                       + b_f2_ref[...])
        k = jax.nn.sigmoid(
            jnp.sum(h_y * w_f3a_ref[...], axis=-1, keepdims=True)
            + jnp.sum(h_c * w_f3b_ref[...], axis=-1, keepdims=True)
            + b_f3_ref[...])                                        # (B, 1)
        new_h = k * h_y + (1.0 - k) * h_c

        # rows with t >= length keep their hidden and leave zeros in out_inputs
        valid = len_ref[...] > t                                    # (B, 1)
        h_sc[...] = jnp.where(valid, new_h, h)
        out_ref[t] = jnp.concatenate(
            [jnp.where(valid, ctx, 0.0), jnp.where(valid, new_h, 0.0)],
            axis=-1)                               # one lane-dense (B,2H) store
        return carry

    jax.lax.fori_loop(0, tmax_ref[0], step, 0)
    hfin_ref[...] = h_sc[...]


def _run_decoder(tmax, len2d, gx, h0, am2, am_bias, cm2, cm_bias, p):
    T, B, _ = gx.shape
    H = h0.shape[1]

    tensor_inputs = [
        len2d, gx, h0, am2, am_bias, cm2, cm_bias,
        p['w_rih_c'], p['w_rhh'], p['b_rhh'],
        p['w_cih_c'], p['w_cih_q'], p['b_cih'], p['w_chh'], p['b_chh'],
        p['w_f1'], p['b_f1'], p['w_f2'], p['b_f2'],
        p['w_f3a'], p['w_f3b'], p['b_f3'],
    ]

    def _full(a):
        n = a.ndim
        return pl.BlockSpec(a.shape, lambda *_args, _n=n: (0,) * _n)

    in_specs = [_full(a) for a in tensor_inputs]
    out_specs = (
        pl.BlockSpec((T, B, 2 * H), lambda *_: (0, 0, 0)),
        pl.BlockSpec((B, H), lambda *_: (0, 0)),
    )
    out_shape = (
        jax.ShapeDtypeStruct((T, B, 2 * H), jnp.float32),
        jax.ShapeDtypeStruct((B, H), jnp.float32),
    )
    return pl.pallas_call(
        _decode_loop_kernel,
        out_shape=out_shape,
        grid_spec=pltpu.PrefetchScalarGridSpec(
            num_scalar_prefetch=1,
            grid=(1,),
            in_specs=in_specs,
            out_specs=out_specs,
            scratch_shapes=[pltpu.VMEM((B, H), jnp.float32)],
        ),
        compiler_params=pltpu.CompilerParams(
            dimension_semantics=("arbitrary",),
            vmem_limit_bytes=32 * 1024 * 1024),
    )(tmax, *tensor_inputs)


# --------------------------------------------------------------------------
# Kernel 3: output layer  Linear(2H->H) -> Linear(H->Vp) -> LogSoftmax
#           row-tiled ("parallel"), vocab padded to a multiple of 128.
# --------------------------------------------------------------------------
def _output_layer_kernel(x_ref, w1_ref, b1_ref, w2_ref, b2_ref, o_ref):
    x = x_ref[...].astype(jnp.bfloat16)
    h1 = jnp.dot(x, w1_ref[...], preferred_element_type=jnp.float32) + b1_ref[...]
    logits = (jnp.dot(h1.astype(jnp.bfloat16), w2_ref[...],
                      preferred_element_type=jnp.float32) + b2_ref[...])
    m = jnp.max(logits, axis=-1, keepdims=True)
    lse = jnp.log(jnp.sum(jnp.exp(logits - m), axis=-1, keepdims=True)) + m
    o_ref[...] = logits - lse


def _run_output_layer(x, w1, b1, w2, b2):
    n, d = x.shape
    hmid = w1.shape[1]
    vp = w2.shape[1]
    bn = _row_tile(n)
    # TODO(synk): for realistic vocabularies (10k+) tile Vp with an online
    # logsumexp accumulator instead of a resident (H, Vp) / (bn, Vp) block.
    return pl.pallas_call(
        _output_layer_kernel,
        out_shape=jax.ShapeDtypeStruct((n, vp), jnp.float32),
        grid_spec=pltpu.PrefetchScalarGridSpec(
            num_scalar_prefetch=0,
            grid=(n // bn,),
            in_specs=[pl.BlockSpec((bn, d), lambda i: (i, 0)),
                      pl.BlockSpec((d, hmid), lambda i: (0, 0)),
                      pl.BlockSpec((1, hmid), lambda i: (0, 0)),
                      pl.BlockSpec((hmid, vp), lambda i: (0, 0)),
                      pl.BlockSpec((1, vp), lambda i: (0, 0))],
            out_specs=pl.BlockSpec((bn, vp), lambda i: (i, 0)),
        ),
        compiler_params=pltpu.CompilerParams(
            dimension_semantics=("parallel",),
            vmem_limit_bytes=32 * 1024 * 1024),
    )(x, w1, b1, w2, b2)


# --------------------------------------------------------------------------
# Wrapper (mirrors RNNDecoder.forward)
# --------------------------------------------------------------------------
def _block_diag_bias(lengths, b, s):
    eye = jnp.eye(b, dtype=bool)                                    # (B, B)
    lmask = jnp.arange(s)[None, :] < lengths[:, None]               # (B, S)
    valid = eye[:, :, None] & lmask[None, :, :]                     # (B, B, S)
    return jnp.where(valid, 0.0, NEG_INF).astype(jnp.float32).reshape(b, b * s)


def rnn_decoder_forward(token_ids, lengths, hidden0, attn_memory,
                        memory_lengths, cue_enc_outputs, cue_lengths, params):
    """Returns (log_probs (B, T, V), final hidden (B, H))."""
    B, T = token_ids.shape
    H = hidden0.shape[-1]
    S = attn_memory.shape[1]
    Sc = cue_enc_outputs.shape[1]
    E = params['embedding'].shape[1]

    # XLA glue: embedding gather + time-major layout
    emb = params['embedding'][token_ids]                    # (B, T, E)
    emb_tbe = jnp.transpose(emb, (1, 0, 2))                 # (T, B, E)

    # hoisted x @ W_ih (+ b_ih) for the main GRU: one big MXU matmul
    gx = _run_linear(emb_tbe.reshape(T * B, E).astype(jnp.bfloat16),
                     params['w_rih_x'], params['b_rih']).reshape(T, B, 3 * H)

    # flattened attention memories + block-diagonal additive masks
    am2 = attn_memory.reshape(B * S, H).astype(jnp.bfloat16)
    cm2 = cue_enc_outputs.reshape(B * Sc, H).astype(jnp.bfloat16)
    am_bias = _block_diag_bias(memory_lengths, B, S)
    cm_bias = _block_diag_bias(cue_lengths, B, Sc)

    tmax = jnp.reshape(jnp.max(lengths).astype(jnp.int32), (1,))
    len2d = lengths.reshape(B, 1).astype(jnp.int32)

    out_tb, h_final = _run_decoder(tmax, len2d, gx, hidden0.astype(jnp.float32),
                                   am2, am_bias, cm2, cm_bias, params)

    # output layer on (B*T, 2H), vocab padded to a multiple of 128
    out_inputs = jnp.transpose(out_tb, (1, 0, 2)).reshape(B * T, 2 * H)
    V = params['w_o2'].shape[1]
    Vp = ((V + 127) // 128) * 128
    pad = Vp - V
    w2p = jnp.pad(params['w_o2'], ((0, 0), (0, pad)))
    b2p = jnp.pad(params['b_o2'], ((0, 0), (0, pad)), constant_values=NEG_INF)
    log_probs = _run_output_layer(out_inputs, params['w_o1'], params['b_o1'],
                                  w2p, b2p)[:, :V]
    return log_probs.reshape(B, T, V), h_final


# --------------------------------------------------------------------------
# Deterministic parameter construction (PyTorch shapes, stored transposed for
# lane-dense matmuls; matmul weights in bf16, biases / gate vectors in f32)
# --------------------------------------------------------------------------
def init_params(key, vocab, E, H):
    ks = jax.random.split(key, 22)
    idx = iter(range(22))

    def w(shape, dtype=jnp.bfloat16, scale=0.1):
        return (scale * jax.random.normal(next(ks_iter), shape)).astype(dtype)

    ks_iter = iter(ks)
    del idx
    return dict(
        embedding=w((vocab, E), jnp.float32),
        # GRU (rnn): weight_ih (3H, E+H) split & transposed
        w_rih_x=w((E, 3 * H)), w_rih_c=w((H, 3 * H)),
        b_rih=w((1, 3 * H), jnp.float32),
        w_rhh=w((H, 3 * H)), b_rhh=w((1, 3 * H), jnp.float32),
        # GRU (cue_rnn): weight_ih (3H, 2H) split & transposed
        w_cih_c=w((H, 3 * H)), w_cih_q=w((H, 3 * H)),
        b_cih=w((1, 3 * H), jnp.float32),
        w_chh=w((H, 3 * H)), b_chh=w((1, 3 * H), jnp.float32),
        # fusion: fc1 / fc2 (H,H) transposed; fc3 (1,2H) split into two (1,H)
        w_f1=w((H, H)), b_f1=w((1, H), jnp.float32),
        w_f2=w((H, H)), b_f2=w((1, H), jnp.float32),
        w_f3a=w((1, H), jnp.float32), w_f3b=w((1, H), jnp.float32),
        b_f3=w((1, 1), jnp.float32),
        # output layer: Linear(2H->H), Linear(H->V) (transposed)
        w_o1=w((2 * H, H)), b_o1=w((1, H), jnp.float32),
        w_o2=w((H, vocab)), b_o2=w((1, vocab), jnp.float32),
    )


if __name__ == "__main__":
    # B padded to the 8-sublane width, H a multiple of 128 (lane-dense), V
    # deliberately NOT a multiple of 128 to exercise the vocab-padding path.
    B, T, E, H, V, S, Sc = 8, 8, 64, 128, 250, 16, 8
    key = jax.random.PRNGKey(0)
    kp, k1, k2, k3, k4 = jax.random.split(key, 5)

    params = init_params(kp, V, E, H)
    token_ids = jax.random.randint(k1, (B, T), 0, V)
    lengths = jnp.array([8, 6, 5, 8, 3, 7, 2, 4], dtype=jnp.int32)
    hidden0 = (0.1 * jax.random.normal(k2, (B, H))).astype(jnp.float32)
    attn_memory = (0.1 * jax.random.normal(k3, (B, S, H))).astype(jnp.float32)
    cue_enc_outputs = (0.1 * jax.random.normal(k4, (B, Sc, H))).astype(jnp.float32)
    memory_lengths = jnp.array([16, 10, 7, 16, 4, 12, 3, 8], dtype=jnp.int32)
    cue_lengths = jnp.array([8, 5, 3, 8, 2, 6, 1, 4], dtype=jnp.int32)

    log_probs, h_final = rnn_decoder_forward(
        token_ids, lengths, hidden0, attn_memory, memory_lengths,
        cue_enc_outputs, cue_lengths, params)
    jax.block_until_ready((log_probs, h_final))

    assert log_probs.shape == (B, T, V)
    assert h_final.shape == (B, H)
    assert bool(jnp.all(jnp.isfinite(log_probs)))
    # log-softmax rows should (approximately) sum to 1 in prob space
    assert bool(jnp.allclose(jnp.sum(jnp.exp(log_probs), axis=-1), 1.0, atol=5e-3))
    print("KERNEL_OK")
</pallas_src>

<mosaic_0001>
module attributes {stable_mosaic.version = 11 : i64} {
  func.func @_linear_kernel(%arg0: i32, %arg1: memref<64x64xbf16, #tpu.memory_space<vmem>>, %arg2: memref<64x384xbf16, #tpu.memory_space<vmem>>, %arg3: memref<1x384xf32, #tpu.memory_space<vmem>>, %arg4: memref<64x384xf32, #tpu.memory_space<vmem>>) attributes {dimension_semantics = [#tpu.dimension_semantics<parallel>], iteration_bounds = array<i64: 1>, scalar_prefetch = 0 : i64, scratch_operands = 0 : i64, tpu.core_type = #tpu.core_type<tc>, window_params = [{transform_indices = @transform_0, window_bounds = array<i64: 64, 64>}, {pipeline_mode = #tpu.pipeline_mode<synchronous>, transform_indices = @transform_1, window_bounds = array<i64: 64, 384>}, {pipeline_mode = #tpu.pipeline_mode<synchronous>, transform_indices = @transform_2, window_bounds = array<i64: 1, 384>}, {transform_indices = @transform_3, window_bounds = array<i64: 64, 384>}]} {
    %c0 = arith.constant 0 : index
    %c0_0 = arith.constant 0 : index
    %0 = vector.load %arg1[%c0, %c0_0] : memref<64x64xbf16, #tpu.memory_space<vmem>>, vector<64x64xbf16>
    %c0_1 = arith.constant 0 : index
    %c0_2 = arith.constant 0 : index
    %1 = vector.load %arg2[%c0_1, %c0_2] : memref<64x384xbf16, #tpu.memory_space<vmem>>, vector<64x384xbf16>
    %cst = arith.constant dense<0.000000e+00> : vector<64x384xf32>
    %2 = tpu.matmul %0, %1, %cst {dimension_numbers = #tpu.dot_dimension_numbers<[1], [0], [0], [1], [0, 0, 1, 1], [], []>} : vector<64x64xbf16>, vector<64x384xbf16>, vector<64x384xf32> -> vector<64x384xf32>
    %c0_3 = arith.constant 0 : index
    %c0_4 = arith.constant 0 : index
    %3 = vector.load %arg3[%c0_3, %c0_4] : memref<1x384xf32, #tpu.memory_space<vmem>>, vector<1x384xf32>
    %4 = vector.broadcast %3 : vector<1x384xf32> to vector<64x384xf32>
    %5 = arith.addf %2, %4 : vector<64x384xf32>
    %c0_5 = arith.constant 0 : index
    %c0_6 = arith.constant 0 : index
    %6 = vector.load %arg4[%c0_5, %c0_6] : memref<64x384xf32, #tpu.memory_space<vmem>>, vector<64x384xf32>
    tpu.vector_store %arg4[%c0_5, %c0_6], %5 {strides = array<i32>} : memref<64x384xf32, #tpu.memory_space<vmem>>, vector<64x384xf32>,
    return
  }
  func.func @transform_0(%arg0: i32) -> (i32, i32) {
    %c0_i32 = arith.constant 0 : i32
    %c0_i32_0 = arith.constant 0 : i32
    return %arg0, %c0_i32 : i32, i32
  }
  func.func @transform_1(%arg0: i32) -> (i32, i32) {
    %c0_i32 = arith.constant 0 : i32
    %c0_i32_0 = arith.constant 0 : i32
    %c0_i32_1 = arith.constant 0 : i32
    return %c0_i32, %c0_i32_0 : i32, i32
  }
  func.func @transform_2(%arg0: i32) -> (i32, i32) {
    %c0_i32 = arith.constant 0 : i32
    %c0_i32_0 = arith.constant 0 : i32
    %c0_i32_1 = arith.constant 0 : i32
    return %c0_i32, %c0_i32_0 : i32, i32
  }
  func.func @transform_3(%arg0: i32) -> (i32, i32) {
    %c0_i32 = arith.constant 0 : i32
    %c0_i32_0 = arith.constant 0 : i32
    return %arg0, %c0_i32 : i32, i32
  }
}

</mosaic_0001>

<bundles_post_ra>
// kernel: tpu_custom_call.1
= control target key start
LH: loop header
LB: loop body
LE: loop exit
PB: predicated region body
PF: predicated region fallthrough
CT: control target
= control target key end

     0   :  { %8 = vsyncpa [#allocation3], 0  ;;  %s576_s0 = inlined_call_operand.hbm [shape: bf16[64,64], index: 0, kind: input, shape index: {}]   ;;  %s577_s1 = inlined_call_operand.hbm [shape: bf16[64,384], index: 1, kind: input, shape index: {}]   ;;  %s578_s2 = inlined_call_operand.vmem [shape: f32[1,384], index: 2, kind: input, shape index: {}]   ;;  %s579_s3 = inlined_call_operand.hbm [shape: f32[64,384], index: 3, kind: output, shape index: {}]  }
   0x1   :  { %9 = vsyncpa [#allocation6], 0 }
   0x2   :  { %10 = vsyncpa [#allocation4], 0  ;;  %s506_s12 = smov [#allocation2]  }
   0x3   :  { %s16_s13 = sshll.u32 %s506_s12, 4  ;;  %s17_s13 = int_to_ptr.vmem [resolvable:$true] %s16_s13 }
   0x4   :  { %s448_s14 = scalar_lea.vmem %s17_s13, 512  ;;  %p453_p1 = scmp.lt.s32.totalorder %s17_s13, %s17_s13 }
   0x5   :  { %p449_p0 = scmp.ne.s32.totalorder %s17_s13, %s448_s14  ;;  %p454_p2 = scmp.lt.s32.totalorder %s448_s14, %s448_s14 }
   0x7   :  { %p455_p3 = por %p454_p2, %p453_p1 }
   0x9   :  { %p456_p4 = pnand %p455_p3, %p449_p0 }
   0xb   :  { %459 = shalt.err (!%p456_p4)
}
   0xc   :  { %s507_s15 = smov 64   ;;  %s508_s16 = smov 4  }
   0xd   :  { %22 = dma.hbm_to_vmem [thread:$0]  %s576_s0, 512, %s17_s13, [#allocation3], %s507_s15, %s507_s15, %s508_s16  }
   0xe   :  { %s509_s19 = smov [#allocation5]  }
   0xf   :  { %s28_s20 = sshll.u32 %s509_s19, 4  ;;  %s29_s20 = int_to_ptr.vmem [resolvable:$true] %s28_s20 }
  0x10   :  { %s468_s21 = scalar_lea.vmem %s29_s20, 1536  ;;  %p473_p6 = scmp.lt.s32.totalorder %s29_s20, %s29_s20 }
  0x11   :  { %p469_p5 = scmp.ne.s32.totalorder %s29_s20, %s468_s21  ;;  %p474_p7 = scmp.lt.s32.totalorder %s468_s21, %s468_s21 }
  0x13   :  { %p475_p8 = por %p474_p7, %p473_p6 }
  0x15   :  { %p476_p9 = pnand %p475_p8, %p469_p5 }
  0x17   :  { %479 = shalt.err (!%p476_p9)
}
  0x18   :  { %s510_s22 = smov 192   ;;  %s511_s23 = smov 12  }
  0x19   :  { %34 = dma.hbm_to_vmem [thread:$0]  %s577_s1, 1536, %s29_s20, [#allocation6], %s510_s22, %s510_s22, %s511_s23  }
  0x1a   :  { %500 = dma.done.wait [#allocation3], 512  }
  0x1b   :  { %501 = vsyncadd [#allocation3], 4294966784 }
  0x1c   :  { %502 = dma.done.wait [#allocation6], 1536  }
  0x1d   :  { %503 = vsyncadd [#allocation6], 4294965760  ;;  %v512_v0 = vmov 0   ;;  %v420_v1 = vld [vmem:[#allocation5 + $0x4c] ss:$12 sps:$4 sm:$0xff]   ;;  %v434_v10 = vld [vmem:[#allocation2] sm:$0xff]   ;;  %v70_v17 = vlaneseq }
  0x1e   :  { %214 = vmatprep.mubr.bf16.mxu0 %v512_v0  ;;  %v422_v2 = vld [vmem:[#allocation5 + $0x48] ss:$12 sps:$4 sm:$0xff]   ;;  %190 = vmatprep.subr.bf16.mxu0 %v420_v1  ;;  %v425_v4 = vld [vmem:[#allocation5 + $0x30] ss:$12 sps:$4 sm:$0xff]   ;;  %v428_v7 = vld [vmem:[#allocation5 + $0x18] ss:$12 sps:$4 sm:$0xff]  }
  0x1f   :  { %v423_v3 = vld [vmem:[#allocation5 + $0x34] ss:$12 sps:$4 sm:$0xff]   ;;  %191 = vmatpush1.bf16.msra.mxu0 %v422_v2  ;;  %v426_v5 = vld [vmem:[#allocation5 + $0x1c] ss:$12 sps:$4 sm:$0xff]   ;;  %v430_v8 = vld [vmem:[#allocation5 + $0x4] ss:$12 sps:$4 sm:$0xff]  }
  0x20   :  { %192 = vmatprep.subr.bf16.mxu0 %v423_v3  ;;  %v429_v6 = vld [vmem:[#allocation5 + $0x50] ss:$12 sps:$4 sm:$0xff]   ;;  %v433_v9 = vld [vmem:[#allocation5 + $0x38] ss:$12 sps:$4 sm:$0xff]   ;;  %vm169_vm0 = vcmask 523264   ;;  %v437_v15 = vld [vmem:[#allocation2 + $0x8] sm:$0xff]  }
  0x21   :  { %394 = vmatprep.subr.bf16.mxu1 %v429_v6  ;;  %v435_v11 = vld [vmem:[#allocation5 + $0x20] ss:$12 sps:$4 sm:$0xff]   ;;  %402 = vmatprep.mubr.msk.bf16.mxu1 %vm169_vm0, %v434_v10  ;;  %v436_v13 = vld [vmem:[#allocation5 + $0x8] ss:$12 sps:$4 sm:$0xff]   ;;  %v439_v16 = vld [vmem:[#allocation2 + $0x18] sm:$0xff]   ;;  %v71_v18 = vshrl.u32 %v70_v17, 7 }
  0x22   :  { %395 = vmatpush3.bf16.msra.mxu1 %v429_v6  ;;  %v432_v12 = vld [vmem:[#allocation5] ss:$12 sps:$4 sm:$0xff]   ;;  %v438_v14 = vld [vmem:[#allocation2 + $0x10] sm:$0xff]  }
  0x23   :  { %193 = vmatpush1.bf16.msra.mxu0 %v425_v4  ;;  %396 = vmatprep.subr.bf16.mxu1 %v433_v9  ;;  %v72_v19 = vsub.s32 0, %v71_v18  ;;  %v68_v20 = vld [vmem:[%s578_s2] sm:$0x7]  ;;  %v76_v21 = vsub.s32 1, %v71_v18  ;;  %v80_v23 = vsub.s32 2, %v71_v18  ;;  %s513_s2 = smov [#allocation7]  }
  0x24   :  { %194 = vmatprep.subr.bf16.mxu0 %v426_v5  ;;  %s349_s26 = sshll.u32 %s513_s2, 4  ;;  %s350_s26 = int_to_ptr.vmem [resolvable:$true] %s349_s26 }
  0x25   :  { %v553_v22 = vrot.slane %v68_v20, %v72_v19  ;;  %v555_v24 = vrot.slane %v68_v20, %v76_v21  ;;  %v81_v27 = vrot.slane %v68_v20, %v80_v23  ;;  %s480_s27 = scalar_lea.vmem %s350_s26, 3072  ;;  %p485_p11 = scmp.lt.s32.totalorder %s350_s26, %s350_s26 }
  0x26   :  { %397 = vmatpush3.bf16.msra.mxu1 %v433_v9  ;;  %p481_p10 = scmp.ne.s32.totalorder %s350_s26, %s480_s27  ;;  %p486_p12 = scmp.lt.s32.totalorder %s480_s27, %s480_s27 }
  0x27   :  { %195 = vmatpush1.bf16.msra.mxu0 %v428_v7  ;;  %398 = vmatprep.subr.bf16.mxu1 %v435_v11 }
  0x28   :  { %196 = vmatprep.subr.bf16.mxu0 %v430_v8  ;;  %p487_p13 = por %p486_p12, %p485_p11 }
  0x2a   :  { %399 = vmatpush3.bf16.msra.mxu1 %v435_v11  ;;  %p488_p0 = pnand %p487_p13, %p481_p10 }
  0x2b   :  { %197 = vmatpush1.bf16.msra.mxu0 %v432_v12  ;;  %400 = vmatprep.subr.bf16.mxu1 %v436_v13 }
  0x2e   :  { %378 = vmatmul.mubr.msk.bf16.vlgmr.msra.gmra.mxu0 %vm169_vm0, %v434_v10  ;;  %401 = vmatpush3.bf16.msra.mxu1 %v436_v13 }
  0x2f   :  { %224 = vmatprep.mubr.bf16.mxu0 %v512_v0 }
  0x31   :  { %403 = vmatmul.mubr.msk.bf16.vlgmr.msra.gmra.mxu1 %vm169_vm0, %v437_v15 }
  0x32   :  { %406 = vmatprep.mubr.msk.bf16.mxu1 %vm169_vm0, %v438_v14 }
  0x36   :  { %379 = vmatmul.mubr.msk.bf16.gmra.mxu0 %vm169_vm0, %v437_v15 }
  0x37   :  { %234 = vmatprep.mubr.bf16.mxu0 %v512_v0 }
  0x39   :  { %407 = vmatmul.mubr.msk.bf16.gmra.mxu1 %vm169_vm0, %v439_v16 }
  0x3e   :  { %380 = vmatmul.mubr.msk.bf16.gmra.mxu0 %vm169_vm0, %v438_v14 }
  0x3f   :  { %244 = vmatprep.mubr.bf16.mxu0 %v512_v0 }
  0x46   :  { %381 = vmatmul.mubr.msk.bf16.gmra.mxu0 %vm169_vm0, %v439_v16 }
  0xee   :  { %v216_v25 = vpop.f32.mrf.mxu0 }
  0xef   :  { %v217_v26 = vadd.f32 %v216_v25, %v553_v22 }
  0xf0   :  { %v218_v28 = vpop.f32.mrf.mxu0 }
  0xf1   :  { %320 = vst [vmem:[#allocation7] sm:$0xff] %v217_v26  ;;  %v219_v29 = vadd.f32 %v218_v28, %v555_v24  ;;  %v404_v31 = vpop.f32.mrf.mxu1 }
  0xf2   :  { %v220_v30 = vpop.f32.mrf.mxu0  ;;  %v298_v33 = vadd.f32 %v404_v31, %v81_v27 }
  0xf3   :  { %321 = vst [vmem:[#allocation7 + $0x8] sm:$0xff] %v219_v29  ;;  %v221_v32 = vadd.f32 %v220_v30, %v553_v22  ;;  %v289_v35 = vpop.f32.mrf.mxu1 }
  0xf4   :  { %v222_v34 = vpop.f32.mrf.mxu0  ;;  %328 = vst [vmem:[#allocation7 + $0x40] sm:$0xff] %v298_v33  ;;  %v290_v37 = vadd.f32 %v289_v35, %v81_v27 }
  0xf5   :  { %323 = vst [vmem:[#allocation7 + $0x18] sm:$0xff] %v221_v32  ;;  %v223_v36 = vadd.f32 %v222_v34, %v555_v24  ;;  %v405_v39 = vpop.f32.mrf.mxu1 }
  0xf6   :  { %v226_v38 = vpop.f32.mrf.mxu0  ;;  %322 = vst [vmem:[#allocation7 + $0x10] sm:$0xff] %v290_v37  ;;  %v301_v41 = vadd.f32 %v405_v39, %v81_v27 }
  0xf7   :  { %324 = vst [vmem:[#allocation7 + $0x20] sm:$0xff] %v223_v36  ;;  %v227_v40 = vadd.f32 %v226_v38, %v553_v22  ;;  %v292_v43 = vpop.f32.mrf.mxu1 }
  0xf8   :  { %v228_v42 = vpop.f32.mrf.mxu0  ;;  %331 = vst [vmem:[#allocation7 + $0x58] sm:$0xff] %v301_v41  ;;  %v293_v45 = vadd.f32 %v292_v43, %v81_v27 }
  0xf9   :  { %326 = vst [vmem:[#allocation7 + $0x30] sm:$0xff] %v227_v40  ;;  %v229_v44 = vadd.f32 %v228_v42, %v555_v24  ;;  %v408_v47 = vpop.f32.mrf.mxu1 }
  0xfa   :  { %v230_v46 = vpop.f32.mrf.mxu0  ;;  %325 = vst [vmem:[#allocation7 + $0x28] sm:$0xff] %v293_v45  ;;  %v314_v49 = vadd.f32 %v408_v47, %v81_v27 }
  0xfb   :  { %327 = vst [vmem:[#allocation7 + $0x38] sm:$0xff] %v229_v44  ;;  %v231_v48 = vadd.f32 %v230_v46, %v553_v22  ;;  %v305_v51 = vpop.f32.mrf.mxu1 }
  0xfc   :  { %v232_v50 = vpop.f32.mrf.mxu0  ;;  %340 = vst [vmem:[#allocation7 + $0xa0] sm:$0xff] %v314_v49  ;;  %v306_v53 = vadd.f32 %v305_v51, %v81_v27 }
  0xfd   :  { %329 = vst [vmem:[#allocation7 + $0x48] sm:$0xff] %v231_v48  ;;  %v233_v52 = vadd.f32 %v232_v50, %v555_v24  ;;  %v409_v55 = vpop.f32.mrf.mxu1 }
  0xfe   :  { %v236_v54 = vpop.f32.mrf.mxu0  ;;  %334 = vst [vmem:[#allocation7 + $0x70] sm:$0xff] %v306_v53  ;;  %v317_v57 = vadd.f32 %v409_v55, %v81_v27 }
  0xff   :  { %330 = vst [vmem:[#allocation7 + $0x50] sm:$0xff] %v233_v52  ;;  %v237_v56 = vadd.f32 %v236_v54, %v553_v22  ;;  %v308_v59 = vpop.f32.mrf.mxu1 }
 0x100   :  { %v238_v58 = vpop.f32.mrf.mxu0  ;;  %343 = vst [vmem:[#allocation7 + $0xb8] sm:$0xff] %v317_v57  ;;  %v309_v61 = vadd.f32 %v308_v59, %v81_v27 }
 0x101   :  { %332 = vst [vmem:[#allocation7 + $0x60] sm:$0xff] %v237_v56  ;;  %v239_v60 = vadd.f32 %v238_v58, %v555_v24 }
 0x102   :  { %v240_v62 = vpop.f32.mrf.mxu0  ;;  %337 = vst [vmem:[#allocation7 + $0x88] sm:$0xff] %v309_v61 }
 0x103   :  { %333 = vst [vmem:[#allocation7 + $0x68] sm:$0xff] %v239_v60  ;;  %v241_v63 = vadd.f32 %v240_v62, %v553_v22 }
 0x104   :  { %v242_v0 = vpop.f32.mrf.mxu0 }
 0x105   :  { %335 = vst [vmem:[#allocation7 + $0x78] sm:$0xff] %v241_v63  ;;  %v243_v1 = vadd.f32 %v242_v0, %v555_v24 }
 0x106   :  { %v246_v2 = vpop.f32.mrf.mxu0 }
 0x107   :  { %336 = vst [vmem:[#allocation7 + $0x80] sm:$0xff] %v243_v1  ;;  %v247_v3 = vadd.f32 %v246_v2, %v553_v22 }
 0x108   :  { %v248_v4 = vpop.f32.mrf.mxu0 }
 0x109   :  { %338 = vst [vmem:[#allocation7 + $0x90] sm:$0xff] %v247_v3  ;;  %v249_v5 = vadd.f32 %v248_v4, %v555_v24 }
 0x10a   :  { %v250_v6 = vpop.f32.mrf.mxu0 }
 0x10b   :  { %339 = vst [vmem:[#allocation7 + $0x98] sm:$0xff] %v249_v5  ;;  %v251_v7 = vadd.f32 %v250_v6, %v553_v22 }
 0x10c   :  { %v252_v8 = vpop.f32.mrf.mxu0 }
 0x10d   :  { %341 = vst [vmem:[#allocation7 + $0xa8] sm:$0xff] %v251_v7  ;;  %v253_v9 = vadd.f32 %v252_v8, %v555_v24 }
 0x10f   :  { %342 = vst [vmem:[#allocation7 + $0xb0] sm:$0xff] %v253_v9 }
 0x110   :  { %491 = shalt.err (!%p488_p0)
}
 0x111   :  { %s514_s28 = smov 384   ;;  %s515_s29 = smov 24  }
 0x112   :  { %355 = dma.vmem_to_hbm [thread:$0]  %s350_s26, 3072, %s579_s3, [#allocation4], %s514_s28, %s514_s28, %s515_s29  }
 0x113   :  { %504 = dma.done.wait [#allocation4], 3072  }
 0x114   :  { %505 = vsyncadd [#allocation4], 4294964224 }
 0x115   :  { %359 = vsyncpa [#allocation3], 1 }
 0x116   :  { %360 = vsyncpa [#allocation6], 1 }
 0x117   :  { %361 = vsyncpa [#allocation4], 1 }

</bundles_post_ra>
